<compile_context>
chip_gen: v7x
topology: tpu7x:2x2x1
jax: 0.10.0
libtpu: 0.0.40
codegen_flags: <defaults>
</compile_context>

<pallas_src>
import functools

import jax
import jax.numpy as jnp
from jax.experimental import pallas as pl
from jax.experimental.pallas import tpu as pltpu


def make_adaptive_mask_params(size, init_ratio, shape, dtype=jnp.float32):
    """Deterministic parameter/buffer init mirroring AdaptiveMask.__init__."""
    size_ratio = jnp.zeros(shape, dtype=dtype) + init_ratio                  # nn.Parameter
    mask_template = jnp.linspace(1.0 - size, 0.0, num=size, dtype=dtype)     # buffer
    return size_ratio, mask_template


def _adaptive_mask_kernel(x_ref, t_ref, c_ref, o_ref, *, ramp_size):
    """out = x * clamp((template + ratio*size) / ramp + 1, 0, 1).

    t_ref : (1, Lb) or (1, 1, S)   narrowed template (block-row), f32
    c_ref : (G, 1)  or (G, 1, 1)   per-(b,h) constant size_ratio*size, f32
    Broadcasting builds the mask in-registers; nothing mask-sized ever
    touches HBM.
    """
    mask = jnp.clip((t_ref[...] + c_ref[...]) / ramp_size + 1.0, 0.0, 1.0)
    xv = x_ref[...]
    if xv.dtype == jnp.float32 or xv.dtype == jnp.bfloat16:
        # Multiply in x's own dtype (bf16 VPU on v6e/v7x); mask cast is tiny.
        o_ref[...] = (xv * mask.astype(xv.dtype)).astype(o_ref.dtype)
    else:
        o_ref[...] = (xv.astype(jnp.float32) * mask).astype(o_ref.dtype)


def _step_vmem_bytes(G, Lb, x_itemsize):
    """Realistic per-grid-step VMEM footprint (review item: budget x+mask+out)."""
    x_blk = G * Lb * x_itemsize
    out_blk = G * Lb * x_itemsize
    t_blk = Lb * 4                              # f32 template block-row
    c_blk = max(G, 8) * 128 * 4                 # (G,1) f32 pads to >= (8,128)
    mask_tmp = G * Lb * 4                       # in-kernel f32 mask intermediate
    return 2 * (x_blk + out_blk + t_blk + c_blk) + mask_tmp   # double-buffered I/O


def _plan_tiling(BH, M, S, itemsize, vmem_budget_bytes):
    """Pick (layout, G rows per step, Mb M-chunk per step).

    Preference order: fits the VMEM budget > lane-dense stores (Lb % 128 == 0)
    > >=4 total steps (2 per TC on v7x) > >=2 outer steps (megacore sharding)
    > largest block, with a flat-2D tiebreak.
    """
    g_opts = [d for d in range(1, BH + 1)
              if BH % d == 0 and (d % 8 == 0 or d == BH)]      # (8,128) sublane rule
    m_opts = [d for d in range(1, M + 1) if M % d == 0]
    best, best_key = None, None
    for G in g_opts:
        for Mb in m_opts:
            Lb = Mb * S
            for layout in ("flat2d", "nat3d"):
                if layout == "flat2d":
                    legal = (Lb % 128 == 0) or (Mb == M)        # block last dim rule
                    lane_dense = (Lb % 128 == 0)
                else:  # (G, Mb, S) blocks on (BH, M, S)
                    legal = (Mb % 8 == 0) or (Mb == M)
                    lane_dense = (S % 128 == 0)
                if not legal:
                    continue
                bytes_step = _step_vmem_bytes(G, Lb, itemsize)
                fits = bytes_step <= vmem_budget_bytes
                steps_outer = BH // G
                steps_total = steps_outer * (M // Mb)
                key = (fits,
                       lane_dense,
                       steps_total >= 4,
                       steps_outer >= 2,
                       bytes_step if fits else -bytes_step,    # big if fits, else small
                       layout == "flat2d")
                if best_key is None or key > best_key:
                    best_key, best = key, (layout, G, Mb)
    return best


def adaptive_mask_forward(x, size_ratio, mask_template, *, size, ramp_size,
                          vmem_budget_bytes=16 * 1024 * 1024):
    """Pallas implementation of AdaptiveMask.forward.

    x:             (B, H, M, S), S <= size
    size_ratio:    broadcastable to (B, H, 1, 1)   (nn.Parameter)
    mask_template: (size,)                          (buffer)
    """
    B, H, M, S = x.shape
    assert S <= size
    BH = B * H
    L = M * S
    itemsize = jnp.dtype(x.dtype).itemsize

    # Tiny kernel-side operands (mask itself is never built in HBM):
    #   c = size_ratio * size      per (b,h) row, f32
    #   t = narrowed template      (`narrow` is a static slice), f32
    c = jnp.broadcast_to(size_ratio, (B, H, 1, 1)).reshape(BH, 1).astype(jnp.float32)
    c = c * float(size)
    t = mask_template[size - S:].astype(jnp.float32)                          # (S,)

    layout, G, Mb = _plan_tiling(BH, M, S, itemsize, vmem_budget_bytes)
    Lb = Mb * S

    if layout == "flat2d":
        # Lane-dense flattened layout: each (b,h) slab is a row of length M*S,
        # tiled in Lb = Mb*S chunks.  Template is pre-tiled to ONE block row
        # only (a few KiB), reused by every grid step via a constant index_map.
        xf = x.reshape(BH, L)
        t_arr = jnp.tile(t, Mb).reshape(1, Lb)
        c_arr = c                                                             # (BH, 1)
        grid = (BH // G, M // Mb)
        in_specs = [
            pl.BlockSpec((G, Lb), lambda i, j: (i, j)),
            pl.BlockSpec((1, Lb), lambda i, j: (0, 0)),
            pl.BlockSpec((G, 1), lambda i, j: (i, 0)),
        ]
        out_spec = pl.BlockSpec((G, Lb), lambda i, j: (i, j))
        out_shape = jax.ShapeDtypeStruct((BH, L), x.dtype)
    else:
        # Natural (BH, M, S) fallback: keeps M tileable even when no
        # 128-aligned flattened chunk exists (stores may be masked, but blocks
        # stay within the VMEM budget and pipelining is preserved).
        # TODO(synk): tile S itself for the extreme single-row-too-big case.
        xf = x.reshape(BH, M, S)
        t_arr = t.reshape(1, 1, S)
        c_arr = c.reshape(BH, 1, 1)
        grid = (BH // G, M // Mb)
        in_specs = [
            pl.BlockSpec((G, Mb, S), lambda i, j: (i, j, 0)),
            pl.BlockSpec((1, 1, S), lambda i, j: (0, 0, 0)),
            pl.BlockSpec((G, 1, 1), lambda i, j: (i, 0, 0)),
        ]
        out_spec = pl.BlockSpec((G, Mb, S), lambda i, j: (i, j, 0))
        out_shape = jax.ShapeDtypeStruct((BH, M, S), x.dtype)

    kernel = functools.partial(_adaptive_mask_kernel, ramp_size=float(ramp_size))

    out = pl.pallas_call(
        kernel,
        out_shape=out_shape,
        grid_spec=pltpu.PrefetchScalarGridSpec(
            num_scalar_prefetch=0,
            grid=grid,
            in_specs=in_specs,
            out_specs=out_spec,
        ),
        compiler_params=pltpu.CompilerParams(
            # All blocks are independent: both axes parallel; the outer axis
            # shards across TensorCores on megacore parts.
            dimension_semantics=("parallel", "parallel"),
            vmem_limit_bytes=32 * 1024 * 1024,
        ),
    )(xf, t_arr, c_arr)

    return out.reshape(B, H, M, S)


def adaptive_mask_reference(x, size_ratio, mask_template, *, size, ramp_size):
    """Pure-JAX reference matching the PyTorch forward exactly."""
    mask = mask_template + size_ratio * size           # (B, H, 1, size)
    mask = mask / ramp_size + 1.0
    mask = jnp.clip(mask, 0.0, 1.0)
    S = x.shape[-1]
    if S < size:
        mask = mask[..., size - S:]
    return x * mask


if __name__ == "__main__":
    # AdaptiveMask(size=16, ramp_size=4, init_ratio=0.3, shape=(B, H, 1, 1))
    SIZE, RAMP, INIT_RATIO = 16, 4, 0.3
    B, H, M, S = 2, 4, 8, 16   # x: (B, H, M, S) with S == size (no narrow)

    size_ratio, mask_template = make_adaptive_mask_params(
        SIZE, INIT_RATIO, shape=(B, H, 1, 1))

    key = jax.random.PRNGKey(0)
    x = jax.random.normal(key, (B, H, M, S), dtype=jnp.float32)

    out = adaptive_mask_forward(x, size_ratio, mask_template,
                                size=SIZE, ramp_size=RAMP)
    out = jax.block_until_ready(out)

    ref = adaptive_mask_reference(x, size_ratio, mask_template,
                                  size=SIZE, ramp_size=RAMP)
    assert out.shape == ref.shape and out.dtype == ref.dtype
    assert jnp.allclose(out, ref, atol=1e-6, rtol=1e-6)

    # Narrow path (span < size) with a lane-sparse S to exercise the fallback.
    S2 = 12
    x2 = jax.random.normal(jax.random.PRNGKey(1), (B, H, M, S2), dtype=jnp.float32)
    out2 = jax.block_until_ready(
        adaptive_mask_forward(x2, size_ratio, mask_template,
                              size=SIZE, ramp_size=RAMP))
    ref2 = adaptive_mask_reference(x2, size_ratio, mask_template,
                                   size=SIZE, ramp_size=RAMP)
    assert jnp.allclose(out2, ref2, atol=1e-6, rtol=1e-6)

    print("KERNEL_OK")
</pallas_src>

<mosaic_0001>
module attributes {stable_mosaic.version = 11 : i64} {
  func.func @_adaptive_mask_kernel(%arg0: i32, %arg1: i32, %arg2: memref<8x128xf32, #tpu.memory_space<vmem>>, %arg3: memref<1x128xf32, #tpu.memory_space<vmem>>, %arg4: memref<8x1xf32, #tpu.memory_space<vmem>>, %arg5: memref<8x128xf32, #tpu.memory_space<vmem>>) attributes {dimension_semantics = [#tpu.dimension_semantics<parallel>, #tpu.dimension_semantics<parallel>], iteration_bounds = array<i64: 1, 1>, scalar_prefetch = 0 : i64, scratch_operands = 0 : i64, tpu.core_type = #tpu.core_type<tc>, window_params = [{transform_indices = @transform_0, window_bounds = array<i64: 8, 128>}, {pipeline_mode = #tpu.pipeline_mode<synchronous>, transform_indices = @transform_1, window_bounds = array<i64: 1, 128>}, {transform_indices = @transform_2, window_bounds = array<i64: 8, 1>}, {transform_indices = @transform_3, window_bounds = array<i64: 8, 128>}]} {
    %c0 = arith.constant 0 : index
    %c0_0 = arith.constant 0 : index
    %0 = vector.load %arg3[%c0, %c0_0] : memref<1x128xf32, #tpu.memory_space<vmem>>, vector<1x128xf32>
    %c0_1 = arith.constant 0 : index
    %c0_2 = arith.constant 0 : index
    %1 = vector.load %arg4[%c0_1, %c0_2] : memref<8x1xf32, #tpu.memory_space<vmem>>, vector<8x1xf32>
    %2 = vector.broadcast %0 : vector<1x128xf32> to vector<8x128xf32>
    %3 = vector.broadcast %1 : vector<8x1xf32> to vector<8x128xf32>
    %4 = arith.addf %2, %3 : vector<8x128xf32>
    %cst = arith.constant 4.000000e+00 : f32
    %5 = vector.broadcast %cst : f32 to vector<8x128xf32>
    %6 = arith.divf %4, %5 : vector<8x128xf32>
    %cst_3 = arith.constant 1.000000e+00 : f32
    %7 = vector.broadcast %cst_3 : f32 to vector<8x128xf32>
    %8 = arith.addf %6, %7 : vector<8x128xf32>
    %cst_4 = arith.constant 0.000000e+00 : f32
    %cst_5 = arith.constant 1.000000e+00 : f32
    %9 = vector.broadcast %cst_4 : f32 to vector<8x128xf32>
    %10 = arith.maximumf %9, %8 : vector<8x128xf32>
    %11 = vector.broadcast %cst_5 : f32 to vector<8x128xf32>
    %12 = arith.minimumf %11, %10 : vector<8x128xf32>
    %c0_6 = arith.constant 0 : index
    %c0_7 = arith.constant 0 : index
    %13 = vector.load %arg2[%c0_6, %c0_7] : memref<8x128xf32, #tpu.memory_space<vmem>>, vector<8x128xf32>
    %14 = arith.mulf %13, %12 : vector<8x128xf32>
    %c0_8 = arith.constant 0 : index
    %c0_9 = arith.constant 0 : index
    %15 = vector.load %arg5[%c0_8, %c0_9] : memref<8x128xf32, #tpu.memory_space<vmem>>, vector<8x128xf32>
    tpu.vector_store %arg5[%c0_8, %c0_9], %14 {strides = array<i32>} : memref<8x128xf32, #tpu.memory_space<vmem>>, vector<8x128xf32>,
    return
  }
  func.func @transform_0(%arg0: i32, %arg1: i32) -> (i32, i32) {
    %c0_i32 = arith.constant 0 : i32
    return %arg0, %arg1 : i32, i32
  }
  func.func @transform_1(%arg0: i32, %arg1: i32) -> (i32, i32) {
    %c0_i32 = arith.constant 0 : i32
    %c0_i32_0 = arith.constant 0 : i32
    %c0_i32_1 = arith.constant 0 : i32
    return %c0_i32, %c0_i32_0 : i32, i32
  }
  func.func @transform_2(%arg0: i32, %arg1: i32) -> (i32, i32) {
    %c0_i32 = arith.constant 0 : i32
    %c0_i32_0 = arith.constant 0 : i32
    return %arg0, %c0_i32 : i32, i32
  }
  func.func @transform_3(%arg0: i32, %arg1: i32) -> (i32, i32) {
    %c0_i32 = arith.constant 0 : i32
    return %arg0, %arg1 : i32, i32
  }
}

</mosaic_0001>

<bundles_post_ra>
// kernel: tpu_custom_call.1
= control target key start
LH: loop header
LB: loop body
LE: loop exit
PB: predicated region body
PF: predicated region fallthrough
CT: control target
= control target key end

     0   :  { %s122_s0 = inlined_call_operand.vmem [shape: f32[8,128], index: 0, kind: input, shape index: {}]   ;;  %s123_s1 = inlined_call_operand.vmem [shape: f32[1,128], index: 1, kind: input, shape index: {}]   ;;  %s124_s2 = inlined_call_operand.vmem [shape: f32[8,1], index: 2, kind: input, shape index: {}]   ;;  %s125_s3 = inlined_call_operand.hbm [shape: f32[8,128], index: 3, kind: output, shape index: {}]  }
   0x1   :  { %v16_v0 = vld [vmem:[%s124_s2] sm:$0xff] }
   0x2   :  { %8 = vsyncpa [#allocation3], 0  ;;  %v79_v1 = vmov 0   ;;  %v51_v2 = vld [vmem:[%s123_s1] ss:$0 sm:$0xff]  ;;  %s80_s18 = smov [#allocation2]  }
   0x3   :  { %54 = vset.pattern.permute.xlu0 %v79_v1  ;;  %v34_v8 = vld [vmem:[%s122_s0] sm:$0xff]  ;;  %s43_s19 = sshll.u32 %s80_s18, 4  ;;  %s44_s19 = int_to_ptr.vmem [resolvable:$true] %s43_s19 }
   0x4   :  { %25 = vperm.xlu0 %54, %v16_v0   ;;  %s55_s2 = scalar_lea.vmem %s44_s19, 128  ;;  %p60_p1 = scmp.lt.s32.totalorder %s44_s19, %s44_s19 }
   0x5   :  { %p56_p0 = scmp.ne.s32.totalorder %s44_s19, %s55_s2  ;;  %p61_p2 = scmp.lt.s32.totalorder %s55_s2, %s55_s2 }
   0x7   :  { %p62_p3 = por %p61_p2, %p60_p1 }
   0x9   :  { %p63_p4 = pnand %p62_p3, %p56_p0 }
  0x83   :  { %v26_v3 = vpop.permute.xlu0 %25 }
  0x84   :  { %v28_v4 = vadd.f32 %v51_v2, %v26_v3 }
  0x86   :  { %v30_v5 = vmul.f32 0.25, %v28_v4 }
  0x88   :  { %v31_v6 = vadd.f32 1.0, %v30_v5 }
  0x8a   :  { %v32_v7 = vmax.f32 %v31_v6, 0.0 }
  0x8c   :  { %v33_v9 = vmin.f32 %v32_v7, 1.0 }
  0x8e   :  { %v35_v10 = vmul.f32 %v34_v8, %v33_v9 }
  0x90   :  { %36 = vst [vmem:[#allocation2] sm:$0xff] %v35_v10 }
  0x91   :  { %66 = shalt.err (!%p63_p4)
}
  0x92   :  { %s67_s21 = scalar_lea.hbm %s125_s3, 128 }
  0x93   :  { %p68_p5 = scmp.ne.s32.totalorder %s125_s3, %s67_s21  ;;  %p71_p6 = scmp.lt.u32.totalorder %s67_s21, %s125_s3 }
  0x95   :  { %p73_p7 = pnand %p71_p6, %p68_p5 }
  0x97   :  { %76 = shalt.err (!%p73_p7)
}
  0x98   :  { %46 = dma.vmem_to_hbm [thread:$0]  %s44_s19, 128, %s125_s3, [#allocation3]  }
  0x99   :  { %77 = dma.done.wait [#allocation3], 128  }
  0x9a   :  { %78 = vsyncadd [#allocation3], 4294967168 }
  0x9b   :  { %50 = vsyncpa [#allocation3], 1 }

</bundles_post_ra>
